<compile_context>
chip_gen: v7x
topology: tpu7x:2x2x1
jax: 0.10.0
libtpu: 0.0.40
codegen_flags: <defaults>
</compile_context>

<pallas_src>
import functools

import jax
import jax.numpy as jnp
from jax import lax
from jax.experimental import pallas as pl
from jax.experimental.pallas import tpu as pltpu


def _act_width(S, H):
    """Width of the activation slab: max(S, H) rounded up to a sublane tile."""
    return -(-max(S, H) // 8) * 8


def _traj_gru_kernel(acts_ref, w_ref, b_ref, out_ref, *, T, Bp, H, Wa):
    """
    acts_ref : [(T+1)*Bp, Wa] f32   rows [0, T*Bp)   : time-major x (cols >= S zero)
                                    rows [T*Bp, ...) : h0            (cols >= H zero)
    w_ref    : [Wa+2H+H/2+H/4, LW] bf16  packed weights (see pack_params layout)
    b_ref    : [8, LW] f32               packed biases
    out_ref  : [Bp, LW] f32              fused (mse | ce) head, lane-padded to LW
    """
    H2, H4 = H // 2, H // 4

    # ---- one-time loads: static slices of the three fused slabs ----------
    x_all = acts_ref[0:T * Bp, :].astype(jnp.bfloat16)         # [T*Bp, Wa]
    h = acts_ref[T * Bp:(T + 1) * Bp, 0:H]                     # [Bp, H]  f32 state

    row = 0
    wih = w_ref[row:row + Wa, :]; row += Wa                    # [Wa, LW] bf16 (r|z|n)
    whh = w_ref[row:row + H, :];  row += H                     # [H,  LW] bf16 (r|z|n)
    w1 = w_ref[row:row + H, 0:H2];  row += H                   # [H,  H2]
    w2 = w_ref[row:row + H2, 0:H4]; row += H2                  # [H2, H4]
    w3 = w_ref[row:row + H4, :]                                # [H4, LW] fused fc3 heads

    bih = b_ref[0:1, :]                                        # [1, LW] b_i(r|z) + b_h(r|z) | b_in
    b_hn = jnp.broadcast_to(b_ref[1:2, 0:H], (Bp, H))          # hoisted broadcast
    b1 = b_ref[2:3, 0:H2]
    b2 = b_ref[3:4, 0:H4]
    b3 = b_ref[4:5, :]                                         # [1, LW]

    # ---- hoisted input projection: all T steps in ONE matmul -------------
    gi_all = (jnp.dot(x_all, wih, preferred_element_type=jnp.float32)
              + bih)                                           # [T*Bp, LW] f32

    # ---- GRU recurrence, fully unrolled (T is a static Python int) -------
    # PyTorch GRU cell (gate order r, z, n):
    #   r  = sigmoid(W_ir x + b_ir + W_hr h + b_hr)
    #   z  = sigmoid(W_iz x + b_iz + W_hz h + b_hz)
    #   n  = tanh   (W_in x + b_in + r * (W_hn h + b_hn))
    #   h' = (1 - z) * n + z * h        (== n + z * (h - n))
    for t in range(T):
        gi = gi_all[t * Bp:(t + 1) * Bp, :]                    # sublane-tile aligned
        gh = jnp.dot(h.astype(jnp.bfloat16), whh,
                     preferred_element_type=jnp.float32)       # [Bp, LW]
        rz = jax.nn.sigmoid(gi[:, 0:2 * H] + gh[:, 0:2 * H])   # fused r|z sigmoid
        rg = rz[:, 0:H]
        z = rz[:, H:2 * H]
        n = jnp.tanh(gi[:, 2 * H:3 * H] + rg * (gh[:, 2 * H:3 * H] + b_hn))
        h = n + z * (h - n)

    # ---- MLP head (the module's self.relu is nn.Tanh) ---------------------
    y = jnp.tanh(jnp.dot(h.astype(jnp.bfloat16), w1,
                         preferred_element_type=jnp.float32) + b1)
    y = jnp.tanh(jnp.dot(y.astype(jnp.bfloat16), w2,
                         preferred_element_type=jnp.float32) + b2)
    # Fused fc3_mse | fc3_ce, lane-padded to LW -> unmasked lane-dense store.
    out_ref[...] = (jnp.dot(y.astype(jnp.bfloat16), w3,
                            preferred_element_type=jnp.float32) + b3)


def init_params(key, state_dim, hidden_dim, k, output_mse_size=3):
    """Deterministic parameter init (uniform, PyTorch-default-like scale).

    Kept in un-fused per-gate layout; pack_params fuses/pads once for the kernel.
    All matrices are pre-transposed to [in_features, out_features].
    """
    H = hidden_dim
    ks = jax.random.split(key, 12)

    def u(key, shape, scale):
        return jax.random.uniform(key, shape, jnp.float32, -scale, scale)

    s = 1.0 / jnp.sqrt(H)
    return dict(
        wih=u(ks[0], (3, state_dim, H), s),           # GRU input weights (r, z, n)
        whh=u(ks[1], (3, H, H), s),                   # GRU hidden weights (r, z, n)
        bih=u(ks[2], (3, 1, H), s),
        bhh=u(ks[3], (3, 1, H), s),
        w1=u(ks[4], (H, H // 2), 1.0 / jnp.sqrt(H)),
        b1=u(ks[5], (1, H // 2), 1.0 / jnp.sqrt(H)),
        w2=u(ks[6], (H // 2, H // 4), 1.0 / jnp.sqrt(H // 2)),
        b2=u(ks[7], (1, H // 4), 1.0 / jnp.sqrt(H // 2)),
        w3m=u(ks[8], (H // 4, output_mse_size * k), 1.0 / jnp.sqrt(H // 4)),
        b3m=u(ks[9], (1, output_mse_size * k), 1.0 / jnp.sqrt(H // 4)),
        w3c=u(ks[10], (H // 4, 2 * k), 1.0 / jnp.sqrt(H // 4)),
        b3c=u(ks[11], (1, 2 * k), 1.0 / jnp.sqrt(H // 4)),
    )


def pack_params(params):
    """Build the two fused parameter slabs ONCE (outside the per-call path).

    Weight slab (bf16, [rows, LW]):
      rows [0, Wa)          : wih (r|z|n), x-projection, K padded S -> Wa
      rows [Wa, Wa+H)       : whh (r|z|n)
      rows [Wa+H, Wa+2H)    : fc1
      rows [.., +H/2)       : fc2
      rows [.., +H/4)       : fc3_mse | fc3_ce (lane-padded to LW)
    Bias slab (f32, [8, LW]): rows = [b_i(r|z)+b_h(r|z)|b_in, b_hn, b1, b2, b3, 0, 0, 0]
    """
    wih, whh = params["wih"], params["whh"]
    S, H = wih.shape[1], wih.shape[2]
    H2, H4 = H // 2, H // 4
    Wa = _act_width(S, H)

    wih_all = jnp.concatenate([wih[0], wih[1], wih[2]], axis=1)          # [S, 3H]
    whh_all = jnp.concatenate([whh[0], whh[1], whh[2]], axis=1)          # [H, 3H]
    bih_all = jnp.concatenate([params["bih"][0] + params["bhh"][0],      # r
                               params["bih"][1] + params["bhh"][1],      # z
                               params["bih"][2]], axis=1)                # n (b_hn separate)
    b_hn = params["bhh"][2]                                              # [1, H]
    w3_all = jnp.concatenate([params["w3m"], params["w3c"]], axis=1)     # [H4, n_out]
    b3_all = jnp.concatenate([params["b3m"], params["b3c"]], axis=1)     # [1, n_out]
    n_out = w3_all.shape[1]

    LW = max(128, -(-max(3 * H, n_out) // 128) * 128)                    # lane width

    def pad2(a, rows, cols=LW):
        return jnp.pad(a, ((0, rows - a.shape[0]), (0, cols - a.shape[1])))

    w_slab = jnp.concatenate([
        pad2(wih_all, Wa),
        pad2(whh_all, H),
        pad2(params["w1"], H),
        pad2(params["w2"], H2),
        pad2(w3_all, H4),
    ], axis=0).astype(jnp.bfloat16)

    b_slab = jnp.concatenate([
        pad2(bih_all, 1),
        pad2(b_hn, 1),
        pad2(params["b1"], 1),
        pad2(params["b2"], 1),
        pad2(b3_all, 1),
        jnp.zeros((3, LW), jnp.float32),                                 # full sublane tile
    ], axis=0).astype(jnp.float32)

    return {"w": w_slab, "b": b_slab}


def trajectory_gru_forward(prev_states, current_state, h0, packed,
                           k, output_mse_size=3):
    """
    prev_states  : [B, m, state_dim]
    current_state: [B, state_dim]
    h0           : [B, hidden_dim]   (module uses torch.randn; passed in here)
    packed       : output of pack_params (built once, reused every call)
    Returns (mse_output [B, k, output_mse_size], ce_logits [B, k, 2]).
    """
    B, m, S = prev_states.shape
    H = h0.shape[-1]
    T = m + 1
    Bp = -(-B // 8) * 8                      # sublane-aligned padded batch
    Wa = _act_width(S, H)

    # Per-call activation slab: time-major x (prev frames then current frame),
    # batch padded to Bp, feature dim padded to Wa; h0 appended below.
    x_tm = jnp.concatenate(
        [jnp.transpose(prev_states, (1, 0, 2)), current_state[None, :, :]],
        axis=0).astype(jnp.float32)                                      # [T, B, S]
    x_tm = jnp.pad(x_tm, ((0, 0), (0, Bp - B), (0, Wa - S))).reshape(T * Bp, Wa)
    h0_p = jnp.pad(h0.astype(jnp.float32), ((0, Bp - B), (0, Wa - H)))
    acts = jnp.concatenate([x_tm, h0_p], axis=0)                         # [(T+1)*Bp, Wa]

    LW = packed["w"].shape[1]
    vmem = pl.BlockSpec(memory_space=pltpu.MemorySpace.VMEM)
    out = pl.pallas_call(
        functools.partial(_traj_gru_kernel, T=T, Bp=Bp, H=H, Wa=Wa),
        out_shape=jax.ShapeDtypeStruct((Bp, LW), jnp.float32),
        in_specs=[vmem, vmem, vmem],         # 3 input DMAs + 1 output DMA total
        out_specs=vmem,
    )(acts, packed["w"], packed["b"])

    n_mse = output_mse_size * k
    mse_output = out[:B, :n_mse].reshape(B, k, output_mse_size)
    ce_logits = out[:B, n_mse:n_mse + 2 * k].reshape(B, k, 2)
    return mse_output, ce_logits


def reference_forward(prev_states, current_state, h0, params, k,
                      output_mse_size=3, mxu_dtype=None):
    """Pure-JAX reference (un-fused, mirrors the PyTorch module).

    mxu_dtype=jnp.bfloat16 reproduces the kernel's bf16-operand / f32-accumulate
    matmuls for a tight structural check.
    """
    def md(a, b):
        if mxu_dtype is not None:
            a, b = a.astype(mxu_dtype), b.astype(mxu_dtype)
        return jnp.dot(a, b, preferred_element_type=jnp.float32)

    x = jnp.concatenate([prev_states, current_state[:, None, :]], axis=1)

    def step(h, xt):
        r = jax.nn.sigmoid(md(xt, params["wih"][0]) + params["bih"][0]
                           + md(h, params["whh"][0]) + params["bhh"][0])
        z = jax.nn.sigmoid(md(xt, params["wih"][1]) + params["bih"][1]
                           + md(h, params["whh"][1]) + params["bhh"][1])
        n = jnp.tanh(md(xt, params["wih"][2]) + params["bih"][2]
                     + r * (md(h, params["whh"][2]) + params["bhh"][2]))
        return (1.0 - z) * n + z * h, None

    h, _ = lax.scan(step, h0, jnp.transpose(x, (1, 0, 2)))
    y = jnp.tanh(md(h, params["w1"]) + params["b1"])
    y = jnp.tanh(md(y, params["w2"]) + params["b2"])
    mse = (md(y, params["w3m"]) + params["b3m"]).reshape(-1, k, output_mse_size)
    ce = (md(y, params["w3c"]) + params["b3c"]).reshape(-1, k, 2)
    return mse, ce


if __name__ == "__main__":
    # Small shapes consistent with the module's forward.
    batch = 2
    state_dim = 8
    hidden_dim = 32
    m = 7                # past frames -> sequence length T = m + 1 = 8
    k = 4                # future action frames
    output_mse_size = 3  # action_type='fb_cos_sin', Probabilistic=False

    key = jax.random.PRNGKey(0)
    k_prev, k_cur, k_h0, k_params = jax.random.split(key, 4)

    prev_states = jax.random.normal(k_prev, (batch, m, state_dim), jnp.float32)
    current_state = jax.random.normal(k_cur, (batch, state_dim), jnp.float32)
    # h0 = torch.randn(1, B, H) in the reference; deterministic here.
    h0 = jax.random.normal(k_h0, (batch, hidden_dim), jnp.float32)

    params = init_params(k_params, state_dim, hidden_dim, k, output_mse_size)
    packed = pack_params(params)   # built ONCE; reused for every forward call

    fwd = jax.jit(functools.partial(trajectory_gru_forward,
                                    k=k, output_mse_size=output_mse_size))
    mse_out, ce_out = fwd(prev_states, current_state, h0, packed)
    jax.block_until_ready((mse_out, ce_out))

    assert mse_out.shape == (batch, k, output_mse_size), mse_out.shape
    assert ce_out.shape == (batch, k, 2), ce_out.shape
    assert bool(jnp.all(jnp.isfinite(mse_out))) and bool(jnp.all(jnp.isfinite(ce_out)))

    # Structural check vs. a reference with the same bf16-operand matmuls.
    mse_bf, ce_bf = reference_forward(prev_states, current_state, h0, params,
                                      k, output_mse_size, mxu_dtype=jnp.bfloat16)
    assert jnp.allclose(mse_out, mse_bf, atol=5e-3, rtol=5e-3), \
        float(jnp.max(jnp.abs(mse_out - mse_bf)))
    assert jnp.allclose(ce_out, ce_bf, atol=5e-3, rtol=5e-3), \
        float(jnp.max(jnp.abs(ce_out - ce_bf)))

    # Semantics check vs. the full-f32 reference (bf16-appropriate tolerance).
    mse_ref, ce_ref = reference_forward(prev_states, current_state, h0, params,
                                        k, output_mse_size)
    assert jnp.allclose(mse_out, mse_ref, atol=1e-1), \
        float(jnp.max(jnp.abs(mse_out - mse_ref)))
    assert jnp.allclose(ce_out, ce_ref, atol=1e-1), \
        float(jnp.max(jnp.abs(ce_out - ce_ref)))

    print("KERNEL_OK")
</pallas_src>

<mosaic_0001>
module attributes {stable_mosaic.version = 11 : i64} {
  func.func @_traj_gru_kernel(%arg0: memref<72x32xf32, #tpu.memory_space<vmem>>, %arg1: memref<120x128xbf16, #tpu.memory_space<vmem>>, %arg2: memref<8x128xf32, #tpu.memory_space<vmem>>, %arg3: memref<8x128xf32, #tpu.memory_space<vmem>>) attributes {dimension_semantics = [], scalar_prefetch = 0 : i64, scratch_operands = 0 : i64, tpu.core_type = #tpu.core_type<tc>} {
    %c0 = arith.constant 0 : index
    %c0_0 = arith.constant 0 : index
    %0 = vector.load %arg0[%c0, %c0_0] : memref<72x32xf32, #tpu.memory_space<vmem>>, vector<64x32xf32>
    %1 = arith.truncf %0 : vector<64x32xf32> to vector<64x32xbf16>
    %c64 = arith.constant 64 : index
    %c0_1 = arith.constant 0 : index
    %2 = vector.load %arg0[%c64, %c0_1] : memref<72x32xf32, #tpu.memory_space<vmem>>, vector<8x32xf32>
    %c0_2 = arith.constant 0 : index
    %c0_3 = arith.constant 0 : index
    %3 = vector.load %arg1[%c0_2, %c0_3] : memref<120x128xbf16, #tpu.memory_space<vmem>>, vector<32x128xbf16>
    %c32 = arith.constant 32 : index
    %c0_4 = arith.constant 0 : index
    %4 = vector.load %arg1[%c32, %c0_4] : memref<120x128xbf16, #tpu.memory_space<vmem>>, vector<32x128xbf16>
    %c64_5 = arith.constant 64 : index
    %c0_6 = arith.constant 0 : index
    %5 = vector.load %arg1[%c64_5, %c0_6] : memref<120x128xbf16, #tpu.memory_space<vmem>>, vector<32x16xbf16>
    %c96 = arith.constant 96 : index
    %c0_7 = arith.constant 0 : index
    %6 = vector.load %arg1[%c96, %c0_7] : memref<120x128xbf16, #tpu.memory_space<vmem>>, vector<16x8xbf16>
    %c112 = arith.constant 112 : index
    %c0_8 = arith.constant 0 : index
    %7 = vector.load %arg1[%c112, %c0_8] : memref<120x128xbf16, #tpu.memory_space<vmem>>, vector<8x128xbf16>
    %c0_9 = arith.constant 0 : index
    %c0_10 = arith.constant 0 : index
    %8 = vector.load %arg2[%c0_9, %c0_10] : memref<8x128xf32, #tpu.memory_space<vmem>>, vector<1x128xf32>
    %c1 = arith.constant 1 : index
    %c0_11 = arith.constant 0 : index
    %9 = vector.load %arg2[%c1, %c0_11] : memref<8x128xf32, #tpu.memory_space<vmem>>, vector<1x32xf32>
    %10 = vector.shape_cast %9 : vector<1x32xf32> to vector<1x32xf32>
    %11 = vector.broadcast %10 : vector<1x32xf32> to vector<8x32xf32>
    %c2 = arith.constant 2 : index
    %c0_12 = arith.constant 0 : index
    %12 = vector.load %arg2[%c2, %c0_12] : memref<8x128xf32, #tpu.memory_space<vmem>>, vector<1x16xf32>
    %c3 = arith.constant 3 : index
    %c0_13 = arith.constant 0 : index
    %13 = vector.load %arg2[%c3, %c0_13] : memref<8x128xf32, #tpu.memory_space<vmem>>, vector<1x8xf32>
    %c4 = arith.constant 4 : index
    %c0_14 = arith.constant 0 : index
    %14 = vector.load %arg2[%c4, %c0_14] : memref<8x128xf32, #tpu.memory_space<vmem>>, vector<1x128xf32>
    %cst = arith.constant dense<0.000000e+00> : vector<64x128xf32>
    %15 = tpu.matmul %1, %3, %cst {dimension_numbers = #tpu.dot_dimension_numbers<[1], [0], [0], [1], [0, 0, 1, 1], [], []>} : vector<64x32xbf16>, vector<32x128xbf16>, vector<64x128xf32> -> vector<64x128xf32>
    %16 = vector.broadcast %8 : vector<1x128xf32> to vector<64x128xf32>
    %17 = arith.addf %15, %16 : vector<64x128xf32>
    %18 = vector.extract_strided_slice %17 {offsets = [0, 0], sizes = [8, 128], strides = [1, 1]} : vector<64x128xf32> to vector<8x128xf32>
    %19 = arith.truncf %2 : vector<8x32xf32> to vector<8x32xbf16>
    %cst_15 = arith.constant dense<0.000000e+00> : vector<8x128xf32>
    %20 = tpu.matmul %19, %4, %cst_15 {dimension_numbers = #tpu.dot_dimension_numbers<[1], [0], [0], [1], [0, 0, 1, 1], [], []>} : vector<8x32xbf16>, vector<32x128xbf16>, vector<8x128xf32> -> vector<8x128xf32>
    %21 = vector.extract_strided_slice %18 {offsets = [0, 0], sizes = [8, 64], strides = [1, 1]} : vector<8x128xf32> to vector<8x64xf32>
    %22 = vector.extract_strided_slice %20 {offsets = [0, 0], sizes = [8, 64], strides = [1, 1]} : vector<8x128xf32> to vector<8x64xf32>
    %23 = arith.addf %21, %22 : vector<8x64xf32>
    %24 = arith.negf %23 : vector<8x64xf32>
    %25 = math.exp %24 : vector<8x64xf32>
    %cst_16 = arith.constant 1.000000e+00 : f32
    %26 = vector.broadcast %cst_16 : f32 to vector<8x64xf32>
    %27 = arith.addf %26, %25 : vector<8x64xf32>
    %28 = arith.divf %26, %27 : vector<8x64xf32>
    %29 = vector.extract_strided_slice %28 {offsets = [0, 0], sizes = [8, 32], strides = [1, 1]} : vector<8x64xf32> to vector<8x32xf32>
    %30 = vector.extract_strided_slice %28 {offsets = [0, 32], sizes = [8, 32], strides = [1, 1]} : vector<8x64xf32> to vector<8x32xf32>
    %31 = vector.extract_strided_slice %18 {offsets = [0, 64], sizes = [8, 32], strides = [1, 1]} : vector<8x128xf32> to vector<8x32xf32>
    %32 = vector.extract_strided_slice %20 {offsets = [0, 64], sizes = [8, 32], strides = [1, 1]} : vector<8x128xf32> to vector<8x32xf32>
    %33 = arith.addf %32, %11 : vector<8x32xf32>
    %34 = arith.mulf %29, %33 : vector<8x32xf32>
    %35 = arith.addf %31, %34 : vector<8x32xf32>
    %36 = math.tanh %35 : vector<8x32xf32>
    %37 = arith.subf %2, %36 : vector<8x32xf32>
    %38 = arith.mulf %30, %37 : vector<8x32xf32>
    %39 = arith.addf %36, %38 : vector<8x32xf32>
    %40 = vector.extract_strided_slice %17 {offsets = [8, 0], sizes = [8, 128], strides = [1, 1]} : vector<64x128xf32> to vector<8x128xf32>
    %41 = arith.truncf %39 : vector<8x32xf32> to vector<8x32xbf16>
    %cst_17 = arith.constant dense<0.000000e+00> : vector<8x128xf32>
    %42 = tpu.matmul %41, %4, %cst_17 {dimension_numbers = #tpu.dot_dimension_numbers<[1], [0], [0], [1], [0, 0, 1, 1], [], []>} : vector<8x32xbf16>, vector<32x128xbf16>, vector<8x128xf32> -> vector<8x128xf32>
    %43 = vector.extract_strided_slice %40 {offsets = [0, 0], sizes = [8, 64], strides = [1, 1]} : vector<8x128xf32> to vector<8x64xf32>
    %44 = vector.extract_strided_slice %42 {offsets = [0, 0], sizes = [8, 64], strides = [1, 1]} : vector<8x128xf32> to vector<8x64xf32>
    %45 = arith.addf %43, %44 : vector<8x64xf32>
    %46 = arith.negf %45 : vector<8x64xf32>
    %47 = math.exp %46 : vector<8x64xf32>
    %cst_18 = arith.constant 1.000000e+00 : f32
    %48 = vector.broadcast %cst_18 : f32 to vector<8x64xf32>
    %49 = arith.addf %48, %47 : vector<8x64xf32>
    %50 = arith.divf %48, %49 : vector<8x64xf32>
    %51 = vector.extract_strided_slice %50 {offsets = [0, 0], sizes = [8, 32], strides = [1, 1]} : vector<8x64xf32> to vector<8x32xf32>
    %52 = vector.extract_strided_slice %50 {offsets = [0, 32], sizes = [8, 32], strides = [1, 1]} : vector<8x64xf32> to vector<8x32xf32>
    %53 = vector.extract_strided_slice %40 {offsets = [0, 64], sizes = [8, 32], strides = [1, 1]} : vector<8x128xf32> to vector<8x32xf32>
    %54 = vector.extract_strided_slice %42 {offsets = [0, 64], sizes = [8, 32], strides = [1, 1]} : vector<8x128xf32> to vector<8x32xf32>
    %55 = arith.addf %54, %11 : vector<8x32xf32>
    %56 = arith.mulf %51, %55 : vector<8x32xf32>
    %57 = arith.addf %53, %56 : vector<8x32xf32>
    %58 = math.tanh %57 : vector<8x32xf32>
    %59 = arith.subf %39, %58 : vector<8x32xf32>
    %60 = arith.mulf %52, %59 : vector<8x32xf32>
    %61 = arith.addf %58, %60 : vector<8x32xf32>
    %62 = vector.extract_strided_slice %17 {offsets = [16, 0], sizes = [8, 128], strides = [1, 1]} : vector<64x128xf32> to vector<8x128xf32>
    %63 = arith.truncf %61 : vector<8x32xf32> to vector<8x32xbf16>
    %cst_19 = arith.constant dense<0.000000e+00> : vector<8x128xf32>
    %64 = tpu.matmul %63, %4, %cst_19 {dimension_numbers = #tpu.dot_dimension_numbers<[1], [0], [0], [1], [0, 0, 1, 1], [], []>} : vector<8x32xbf16>, vector<32x128xbf16>, vector<8x128xf32> -> vector<8x128xf32>
    %65 = vector.extract_strided_slice %62 {offsets = [0, 0], sizes = [8, 64], strides = [1, 1]} : vector<8x128xf32> to vector<8x64xf32>
    %66 = vector.extract_strided_slice %64 {offsets = [0, 0], sizes = [8, 64], strides = [1, 1]} : vector<8x128xf32> to vector<8x64xf32>
    %67 = arith.addf %65, %66 : vector<8x64xf32>
    %68 = arith.negf %67 : vector<8x64xf32>
    %69 = math.exp %68 : vector<8x64xf32>
    %cst_20 = arith.constant 1.000000e+00 : f32
    %70 = vector.broadcast %cst_20 : f32 to vector<8x64xf32>
    %71 = arith.addf %70, %69 : vector<8x64xf32>
    %72 = arith.divf %70, %71 : vector<8x64xf32>
    %73 = vector.extract_strided_slice %72 {offsets = [0, 0], sizes = [8, 32], strides = [1, 1]} : vector<8x64xf32> to vector<8x32xf32>
    %74 = vector.extract_strided_slice %72 {offsets = [0, 32], sizes = [8, 32], strides = [1, 1]} : vector<8x64xf32> to vector<8x32xf32>
    %75 = vector.extract_strided_slice %62 {offsets = [0, 64], sizes = [8, 32], strides = [1, 1]} : vector<8x128xf32> to vector<8x32xf32>
    %76 = vector.extract_strided_slice %64 {offsets = [0, 64], sizes = [8, 32], strides = [1, 1]} : vector<8x128xf32> to vector<8x32xf32>
    %77 = arith.addf %76, %11 : vector<8x32xf32>
    %78 = arith.mulf %73, %77 : vector<8x32xf32>
    %79 = arith.addf %75, %78 : vector<8x32xf32>
    %80 = math.tanh %79 : vector<8x32xf32>
    %81 = arith.subf %61, %80 : vector<8x32xf32>
    %82 = arith.mulf %74, %81 : vector<8x32xf32>
    %83 = arith.addf %80, %82 : vector<8x32xf32>
    %84 = vector.extract_strided_slice %17 {offsets = [24, 0], sizes = [8, 128], strides = [1, 1]} : vector<64x128xf32> to vector<8x128xf32>
    %85 = arith.truncf %83 : vector<8x32xf32> to vector<8x32xbf16>
    %cst_21 = arith.constant dense<0.000000e+00> : vector<8x128xf32>
    %86 = tpu.matmul %85, %4, %cst_21 {dimension_numbers = #tpu.dot_dimension_numbers<[1], [0], [0], [1], [0, 0, 1, 1], [], []>} : vector<8x32xbf16>, vector<32x128xbf16>, vector<8x128xf32> -> vector<8x128xf32>
    %87 = vector.extract_strided_slice %84 {offsets = [0, 0], sizes = [8, 64], strides = [1, 1]} : vector<8x128xf32> to vector<8x64xf32>
    %88 = vector.extract_strided_slice %86 {offsets = [0, 0], sizes = [8, 64], strides = [1, 1]} : vector<8x128xf32> to vector<8x64xf32>
    %89 = arith.addf %87, %88 : vector<8x64xf32>
    %90 = arith.negf %89 : vector<8x64xf32>
    %91 = math.exp %90 : vector<8x64xf32>
    %cst_22 = arith.constant 1.000000e+00 : f32
    %92 = vector.broadcast %cst_22 : f32 to vector<8x64xf32>
    %93 = arith.addf %92, %91 : vector<8x64xf32>
    %94 = arith.divf %92, %93 : vector<8x64xf32>
    %95 = vector.extract_strided_slice %94 {offsets = [0, 0], sizes = [8, 32], strides = [1, 1]} : vector<8x64xf32> to vector<8x32xf32>
    %96 = vector.extract_strided_slice %94 {offsets = [0, 32], sizes = [8, 32], strides = [1, 1]} : vector<8x64xf32> to vector<8x32xf32>
    %97 = vector.extract_strided_slice %84 {offsets = [0, 64], sizes = [8, 32], strides = [1, 1]} : vector<8x128xf32> to vector<8x32xf32>
    %98 = vector.extract_strided_slice %86 {offsets = [0, 64], sizes = [8, 32], strides = [1, 1]} : vector<8x128xf32> to vector<8x32xf32>
    %99 = arith.addf %98, %11 : vector<8x32xf32>
    %100 = arith.mulf %95, %99 : vector<8x32xf32>
    %101 = arith.addf %97, %100 : vector<8x32xf32>
    %102 = math.tanh %101 : vector<8x32xf32>
    %103 = arith.subf %83, %102 : vector<8x32xf32>
    %104 = arith.mulf %96, %103 : vector<8x32xf32>
    %105 = arith.addf %102, %104 : vector<8x32xf32>
    %106 = vector.extract_strided_slice %17 {offsets = [32, 0], sizes = [8, 128], strides = [1, 1]} : vector<64x128xf32> to vector<8x128xf32>
    %107 = arith.truncf %105 : vector<8x32xf32> to vector<8x32xbf16>
    %cst_23 = arith.constant dense<0.000000e+00> : vector<8x128xf32>
    %108 = tpu.matmul %107, %4, %cst_23 {dimension_numbers = #tpu.dot_dimension_numbers<[1], [0], [0], [1], [0, 0, 1, 1], [], []>} : vector<8x32xbf16>, vector<32x128xbf16>, vector<8x128xf32> -> vector<8x128xf32>
    %109 = vector.extract_strided_slice %106 {offsets = [0, 0], sizes = [8, 64], strides = [1, 1]} : vector<8x128xf32> to vector<8x64xf32>
    %110 = vector.extract_strided_slice %108 {offsets = [0, 0], sizes = [8, 64], strides = [1, 1]} : vector<8x128xf32> to vector<8x64xf32>
    %111 = arith.addf %109, %110 : vector<8x64xf32>
    %112 = arith.negf %111 : vector<8x64xf32>
    %113 = math.exp %112 : vector<8x64xf32>
    %cst_24 = arith.constant 1.000000e+00 : f32
    %114 = vector.broadcast %cst_24 : f32 to vector<8x64xf32>
    %115 = arith.addf %114, %113 : vector<8x64xf32>
    %116 = arith.divf %114, %115 : vector<8x64xf32>
    %117 = vector.extract_strided_slice %116 {offsets = [0, 0], sizes = [8, 32], strides = [1, 1]} : vector<8x64xf32> to vector<8x32xf32>
    %118 = vector.extract_strided_slice %116 {offsets = [0, 32], sizes = [8, 32], strides = [1, 1]} : vector<8x64xf32> to vector<8x32xf32>
    %119 = vector.extract_strided_slice %106 {offsets = [0, 64], sizes = [8, 32], strides = [1, 1]} : vector<8x128xf32> to vector<8x32xf32>
    %120 = vector.extract_strided_slice %108 {offsets = [0, 64], sizes = [8, 32], strides = [1, 1]} : vector<8x128xf32> to vector<8x32xf32>
    %121 = arith.addf %120, %11 : vector<8x32xf32>
    %122 = arith.mulf %117, %121 : vector<8x32xf32>
    %123 = arith.addf %119, %122 : vector<8x32xf32>
    %124 = math.tanh %123 : vector<8x32xf32>
    %125 = arith.subf %105, %124 : vector<8x32xf32>
    %126 = arith.mulf %118, %125 : vector<8x32xf32>
    %127 = arith.addf %124, %126 : vector<8x32xf32>
    %128 = vector.extract_strided_slice %17 {offsets = [40, 0], sizes = [8, 128], strides = [1, 1]} : vector<64x128xf32> to vector<8x128xf32>
    %129 = arith.truncf %127 : vector<8x32xf32> to vector<8x32xbf16>
    %cst_25 = arith.constant dense<0.000000e+00> : vector<8x128xf32>
    %130 = tpu.matmul %129, %4, %cst_25 {dimension_numbers = #tpu.dot_dimension_numbers<[1], [0], [0], [1], [0, 0, 1, 1], [], []>} : vector<8x32xbf16>, vector<32x128xbf16>, vector<8x128xf32> -> vector<8x128xf32>
    %131 = vector.extract_strided_slice %128 {offsets = [0, 0], sizes = [8, 64], strides = [1, 1]} : vector<8x128xf32> to vector<8x64xf32>
    %132 = vector.extract_strided_slice %130 {offsets = [0, 0], sizes = [8, 64], strides = [1, 1]} : vector<8x128xf32> to vector<8x64xf32>
    %133 = arith.addf %131, %132 : vector<8x64xf32>
    %134 = arith.negf %133 : vector<8x64xf32>
    %135 = math.exp %134 : vector<8x64xf32>
    %cst_26 = arith.constant 1.000000e+00 : f32
    %136 = vector.broadcast %cst_26 : f32 to vector<8x64xf32>
    %137 = arith.addf %136, %135 : vector<8x64xf32>
    %138 = arith.divf %136, %137 : vector<8x64xf32>
    %139 = vector.extract_strided_slice %138 {offsets = [0, 0], sizes = [8, 32], strides = [1, 1]} : vector<8x64xf32> to vector<8x32xf32>
    %140 = vector.extract_strided_slice %138 {offsets = [0, 32], sizes = [8, 32], strides = [1, 1]} : vector<8x64xf32> to vector<8x32xf32>
    %141 = vector.extract_strided_slice %128 {offsets = [0, 64], sizes = [8, 32], strides = [1, 1]} : vector<8x128xf32> to vector<8x32xf32>
    %142 = vector.extract_strided_slice %130 {offsets = [0, 64], sizes = [8, 32], strides = [1, 1]} : vector<8x128xf32> to vector<8x32xf32>
    %143 = arith.addf %142, %11 : vector<8x32xf32>
    %144 = arith.mulf %139, %143 : vector<8x32xf32>
    %145 = arith.addf %141, %144 : vector<8x32xf32>
    %146 = math.tanh %145 : vector<8x32xf32>
    %147 = arith.subf %127, %146 : vector<8x32xf32>
    %148 = arith.mulf %140, %147 : vector<8x32xf32>
    %149 = arith.addf %146, %148 : vector<8x32xf32>
    %150 = vector.extract_strided_slice %17 {offsets = [48, 0], sizes = [8, 128], strides = [1, 1]} : vector<64x128xf32> to vector<8x128xf32>
    %151 = arith.truncf %149 : vector<8x32xf32> to vector<8x32xbf16>
    %cst_27 = arith.constant dense<0.000000e+00> : vector<8x128xf32>
    %152 = tpu.matmul %151, %4, %cst_27 {dimension_numbers = #tpu.dot_dimension_numbers<[1], [0], [0], [1], [0, 0, 1, 1], [], []>} : vector<8x32xbf16>, vector<32x128xbf16>, vector<8x128xf32> -> vector<8x128xf32>
    %153 = vector.extract_strided_slice %150 {offsets = [0, 0], sizes = [8, 64], strides = [1, 1]} : vector<8x128xf32> to vector<8x64xf32>
    %154 = vector.extract_strided_slice %152 {offsets = [0, 0], sizes = [8, 64], strides = [1, 1]} : vector<8x128xf32> to vector<8x64xf32>
    %155 = arith.addf %153, %154 : vector<8x64xf32>
    %156 = arith.negf %155 : vector<8x64xf32>
    %157 = math.exp %156 : vector<8x64xf32>
    %cst_28 = arith.constant 1.000000e+00 : f32
    %158 = vector.broadcast %cst_28 : f32 to vector<8x64xf32>
    %159 = arith.addf %158, %157 : vector<8x64xf32>
    %160 = arith.divf %158, %159 : vector<8x64xf32>
    %161 = vector.extract_strided_slice %160 {offsets = [0, 0], sizes = [8, 32], strides = [1, 1]} : vector<8x64xf32> to vector<8x32xf32>
    %162 = vector.extract_strided_slice %160 {offsets = [0, 32], sizes = [8, 32], strides = [1, 1]} : vector<8x64xf32> to vector<8x32xf32>
    %163 = vector.extract_strided_slice %150 {offsets = [0, 64], sizes = [8, 32], strides = [1, 1]} : vector<8x128xf32> to vector<8x32xf32>
    %164 = vector.extract_strided_slice %152 {offsets = [0, 64], sizes = [8, 32], strides = [1, 1]} : vector<8x128xf32> to vector<8x32xf32>
    %165 = arith.addf %164, %11 : vector<8x32xf32>
    %166 = arith.mulf %161, %165 : vector<8x32xf32>
    %167 = arith.addf %163, %166 : vector<8x32xf32>
    %168 = math.tanh %167 : vector<8x32xf32>
    %169 = arith.subf %149, %168 : vector<8x32xf32>
    %170 = arith.mulf %162, %169 : vector<8x32xf32>
    %171 = arith.addf %168, %170 : vector<8x32xf32>
    %172 = vector.extract_strided_slice %17 {offsets = [56, 0], sizes = [8, 128], strides = [1, 1]} : vector<64x128xf32> to vector<8x128xf32>
    %173 = arith.truncf %171 : vector<8x32xf32> to vector<8x32xbf16>
    %cst_29 = arith.constant dense<0.000000e+00> : vector<8x128xf32>
    %174 = tpu.matmul %173, %4, %cst_29 {dimension_numbers = #tpu.dot_dimension_numbers<[1], [0], [0], [1], [0, 0, 1, 1], [], []>} : vector<8x32xbf16>, vector<32x128xbf16>, vector<8x128xf32> -> vector<8x128xf32>
    %175 = vector.extract_strided_slice %172 {offsets = [0, 0], sizes = [8, 64], strides = [1, 1]} : vector<8x128xf32> to vector<8x64xf32>
    %176 = vector.extract_strided_slice %174 {offsets = [0, 0], sizes = [8, 64], strides = [1, 1]} : vector<8x128xf32> to vector<8x64xf32>
    %177 = arith.addf %175, %176 : vector<8x64xf32>
    %178 = arith.negf %177 : vector<8x64xf32>
    %179 = math.exp %178 : vector<8x64xf32>
    %cst_30 = arith.constant 1.000000e+00 : f32
    %180 = vector.broadcast %cst_30 : f32 to vector<8x64xf32>
    %181 = arith.addf %180, %179 : vector<8x64xf32>
    %182 = arith.divf %180, %181 : vector<8x64xf32>
    %183 = vector.extract_strided_slice %182 {offsets = [0, 0], sizes = [8, 32], strides = [1, 1]} : vector<8x64xf32> to vector<8x32xf32>
    %184 = vector.extract_strided_slice %182 {offsets = [0, 32], sizes = [8, 32], strides = [1, 1]} : vector<8x64xf32> to vector<8x32xf32>
    %185 = vector.extract_strided_slice %172 {offsets = [0, 64], sizes = [8, 32], strides = [1, 1]} : vector<8x128xf32> to vector<8x32xf32>
    %186 = vector.extract_strided_slice %174 {offsets = [0, 64], sizes = [8, 32], strides = [1, 1]} : vector<8x128xf32> to vector<8x32xf32>
    %187 = arith.addf %186, %11 : vector<8x32xf32>
    %188 = arith.mulf %183, %187 : vector<8x32xf32>
    %189 = arith.addf %185, %188 : vector<8x32xf32>
    %190 = math.tanh %189 : vector<8x32xf32>
    %191 = arith.subf %171, %190 : vector<8x32xf32>
    %192 = arith.mulf %184, %191 : vector<8x32xf32>
    %193 = arith.addf %190, %192 : vector<8x32xf32>
    %194 = arith.truncf %193 : vector<8x32xf32> to vector<8x32xbf16>
    %cst_31 = arith.constant dense<0.000000e+00> : vector<8x16xf32>
    %195 = tpu.matmul %194, %5, %cst_31 {dimension_numbers = #tpu.dot_dimension_numbers<[1], [0], [0], [1], [0, 0, 1, 1], [], []>} : vector<8x32xbf16>, vector<32x16xbf16>, vector<8x16xf32> -> vector<8x16xf32>
    %196 = vector.broadcast %12 : vector<1x16xf32> to vector<8x16xf32>
    %197 = arith.addf %195, %196 : vector<8x16xf32>
    %198 = math.tanh %197 : vector<8x16xf32>
    %199 = arith.truncf %198 : vector<8x16xf32> to vector<8x16xbf16>
    %cst_32 = arith.constant dense<0.000000e+00> : vector<8x8xf32>
    %200 = tpu.matmul %199, %6, %cst_32 {dimension_numbers = #tpu.dot_dimension_numbers<[1], [0], [0], [1], [0, 0, 1, 1], [], []>} : vector<8x16xbf16>, vector<16x8xbf16>, vector<8x8xf32> -> vector<8x8xf32>
    %201 = vector.broadcast %13 : vector<1x8xf32> to vector<8x8xf32>
    %202 = arith.addf %200, %201 : vector<8x8xf32>
    %203 = math.tanh %202 : vector<8x8xf32>
    %204 = arith.truncf %203 : vector<8x8xf32> to vector<8x8xbf16>
    %cst_33 = arith.constant dense<0.000000e+00> : vector<8x128xf32>
    %205 = tpu.matmul %204, %7, %cst_33 {dimension_numbers = #tpu.dot_dimension_numbers<[1], [0], [0], [1], [0, 0, 1, 1], [], []>} : vector<8x8xbf16>, vector<8x128xbf16>, vector<8x128xf32> -> vector<8x128xf32>
    %206 = vector.broadcast %14 : vector<1x128xf32> to vector<8x128xf32>
    %207 = arith.addf %205, %206 : vector<8x128xf32>
    %c0_34 = arith.constant 0 : index
    %c0_35 = arith.constant 0 : index
    %208 = vector.load %arg3[%c0_34, %c0_35] : memref<8x128xf32, #tpu.memory_space<vmem>>, vector<8x128xf32>
    tpu.vector_store %arg3[%c0_34, %c0_35], %207 {strides = array<i32>} : memref<8x128xf32, #tpu.memory_space<vmem>>, vector<8x128xf32>,
    return
  }
}

</mosaic_0001>

<bundles_post_ra>
// kernel: trajectory_gru_forward.1
= control target key start
LH: loop header
LB: loop body
LE: loop exit
PB: predicated region body
PF: predicated region fallthrough
CT: control target
= control target key end

     0   :  { %v1189_v0 = vmov 0.0   ;;  %vm1190_vm0 = vmmov 0   ;;  %vm68_vm1 = vcmask 261120   ;;  %s1191_s5 = smov 64   ;;  %s1192_s8 = smov 32   ;;  %vm854_vm2 = vcmask 130048   ;;  %s1438_s1 = inlined_call_operand.vmem [shape: bf16[120,128], index: 1, kind: input, shape index: {}]   ;;  %s1439_s0 = inlined_call_operand.vmem [shape: f32[72,32], index: 0, kind: input, shape index: {}]   ;;  %s1440_s2 = inlined_call_operand.vmem [shape: f32[8,128], index: 2, kind: input, shape index: {}]   ;;  %s1441_s3 = inlined_call_operand.vmem [shape: f32[8,128], index: 3, kind: output, shape index: {}]  }
   0x1   :  { %1041 = vmatprep.subr.bf16.mxu1 %v1189_v0  ;;  %v1130_v1 = vld [vmem:[%s1438_s1] sm:$0xff]   ;;  %1045 = vmatprep.mubr.msk.bf16.mxu1 %vm1190_vm0, %v1189_v0  ;;  %v1223_v2 = vld [vmem:[%s1438_s1 + $0x10] sm:$0xff]   ;;  %v1132_v3 = vld [vmem:[%s1438_s1 + $0x8] sm:$0xff]   ;;  %s1193_s9 = smov 96   ;;  %vm908_vm3 = vcmask 1043456   ;;  %vm904_vm4 = vcmask 64512  }
   0x2   :  { %1029 = vmatprep.subr.bf16.mxu0 %v1130_v1  ;;  %1042 = vmatpush3.bf16.msra.mxu1 %v1223_v2  ;;  %v1232_v4 = vld [vmem:[%s1438_s1 + $0x18] sm:$0xff]   ;;  %v15_v5 = vld [vmem:[%s1439_s0] sm:$0xff]  ;;  %v16_v6 = vld [vmem:[%s1439_s0 + $0x8] sm:$0xff] }
   0x3   :  { %1030 = vmatpush3.bf16.msra.mxu0 %v1130_v1  ;;  %1043 = vmatprep.subr.bf16.mxu1 %v1189_v0  ;;  %v27_v7 = vld [vmem:[%s1439_s0 + $0x40] sm:$0xff]  ;;  %v23_v8 = vpack.c.bf16 %v16_v6, %v15_v5  ;;  %v17_v9 = vld [vmem:[%s1439_s0 + $0x10] sm:$0xff]  ;;  %v18_v10 = vld [vmem:[%s1439_s0 + $0x18] sm:$0xff] }
   0x4   :  { %1031 = vmatprep.subr.bf16.mxu0 %v1132_v3  ;;  %v957_v11 = vld [vmem:[%s1440_s2 + $0x1] ss:$0 sm:$0xff]  ;;  %v146_v12 = vpack.c.bf16 %v27_v7, %v27_v7  ;;  %v24_v13 = vpack.c.bf16 %v18_v10, %v17_v9  ;;  %v1281_v24 = vld [vmem:[%s1440_s2] ss:$0 sm:$0xff]  ;;  %v20_v62 = vld [vmem:[%s1439_s0 + $0x28] sm:$0xff] }
   0x5   :  { %210 = vrot.lane.b32.xlu0 %v957_v11, %s1191_s5  ;;  %1033 = vmatprep.mubr.msk.bf16.mxu0 %vm68_vm1, %v23_v8  ;;  %v19_v61 = vld [vmem:[%s1439_s0 + $0x20] sm:$0xff]  ;;  %v21_v63 = vld [vmem:[%s1439_s0 + $0x30] sm:$0xff] }
   0x6   :  { %1044 = vmatpush3.bf16.msra.mxu1 %v1232_v4  ;;  %v25_v1 = vpack.c.bf16 %v20_v62, %v19_v61 }
   0x7   :  { %1032 = vmatpush3.bf16.msra.mxu0 %v1132_v3  ;;  %1049 = vmatprep.subr.bf16.mxu1 %v1189_v0  ;;  %v22_v3 = vld [vmem:[%s1439_s0 + $0x38] sm:$0xff] }
   0x8   :  { %1057 = vmatprep.subr.bf16.mxu0 %v1189_v0  ;;  %v26_v5 = vpack.c.bf16 %v22_v3, %v21_v63 }
   0x9   :  { %1046 = vmatmul.mubr.msk.bf16.vlgmr.msra.gmra.mrb[0].mxu1 %vm68_vm1, %v146_v12 }
   0xa   :  { %1034 = vmatmul.mubr.msk.bf16.vlgmr.msra.gmra.mrb[0].mxu0 %vm68_vm1, %v24_v13  ;;  %1050 = vmatpush3.bf16.msra.mxu1 %v1223_v2 }
   0xb   :  { %1053 = vmatprep.mubr.msk.bf16.mxu1 %vm1190_vm0, %v1189_v0  ;;  %1051 = vmatprep.subr.bf16.mxu1 %v1189_v0 }
   0xc   :  { %1058 = vmatpush3.bf16.msra.mxu0 %v1223_v2  ;;  %1037 = vmatprep.mubr.msk.bf16.mxu0 %vm68_vm1, %v25_v1 }
   0xd   :  { %1059 = vmatprep.subr.bf16.mxu0 %v1189_v0 }
   0xe   :  { %1052 = vmatpush3.bf16.msra.mxu1 %v1232_v4 }
   0xf   :  { %1065 = vmatprep.subr.bf16.mxu1 %v1189_v0 }
  0x10   :  { %1060 = vmatpush3.bf16.msra.mxu0 %v1232_v4 }
  0x11   :  { %1073 = vmatprep.subr.bf16.mxu0 %v1189_v0 }
  0x12   :  { %1038 = vmatmul.mubr.msk.bf16.gmra.mrb[4].mxu0 %vm68_vm1, %v26_v5 }
  0x13   :  { %1061 = vmatprep.mubr.msk.bf16.mxu0 %vm1190_vm0, %v1189_v0 }
  0x77   :  { %v1270_v14 = vpop.permute.xlu0 %210 }
  0xdc   :  { %v196_v15 = vpop.f32.mrb[0].mxu1 }
  0xdd   :  { %v1272_v16 = vpop.f32.mrb[0].mxu0  ;;  %v213_v17 = vadd.f32 %v1270_v14, %v196_v15  ;;  %v1047_v18 = vpop.f32.mrb[1].mxu1 }
  0xde   :  { %v115_v19 = vpop.f32.mrb[1].mxu0  ;;  %v199_v20 = vpop.f32.mrb[2].mxu1 }
  0xdf   :  { %v1275_v21 = vpop.f32.mrb[2].mxu0  ;;  %215 = vrot.lane.b32.xlu0 %v213_v17, %s1191_s5  ;;  %v1048_v22 = vpop.f32.mrb[3].mxu1  ;;  %v116_v25 = vadd.f32 %v1281_v24, %v115_v19 }
  0xe0   :  { %v118_v23 = vpop.f32.mrb[3].mxu0 }
  0xe1   :  { %v202_v26 = vadd.f32 %v196_v15, %v116_v25  ;;  %v119_v49 = vadd.f32 %v1281_v24, %v118_v23 }
  0xe3   :  { %v968_v27 = vmul.f32 -1.442695, %v202_v26 }
  0xe5   :  { %1137 = vpow2.f32 %v968_v27  ;;  %v1319_v11 = vpop.f32.mrb[4].mxu0 }
  0xe6   :  { %v1321_v12 = vpop.f32.mrb[5].mxu0 }
  0xe7   :  { %v1323_v13 = vpop.f32.mrb[6].mxu0 }
  0xe8   :  { %v1325_v15 = vpop.f32.mrb[7].mxu0 }
  0xef   :  { %v1138_v28 = vpop.eup %1137 }
  0xf0   :  { %v206_v29 = vadd.f32 1.0, %v1138_v28 }
  0xf2   :  { %1139 = vrcp.f32 %v206_v29 }
  0xfc   :  { %v1140_v30 = vpop.eup %1139 }
 0x151   :  { %v216_v31 = vpop.permute.xlu0 %215 }
 0x152   :  { %v218_v32 = vmul.f32 %v1140_v30, %v216_v31 }
 0x154   :  { %220 = vrot.lane.b32.xlu1 %v218_v32, %s1191_s5 }
 0x1c6   :  { %v221_v33 = vpop.permute.xlu1 %220 }
 0x1c7   :  { %v223_v34 = vadd.f32 %v221_v33, %v116_v25  ;;  %v124_v25 = vadd.f32 %v1272_v16, %v1281_v24 }
 0x1c9   :  { %1141 = vtanh.f32 %v223_v34 }
 0x1d3   :  { %v1142_v35 = vpop.eup %1141 }
 0x1d4   :  { %226 = vrot.lane.b32.xlu1 %v1142_v35, %s1191_s5 }
 0x246   :  { %v227_v36 = vpop.permute.xlu1 %226 }
 0x247   :  { %v229_v37 = vsub.f32 %v27_v7, %v227_v36 }
 0x249   :  { %231 = vrot.lane.b32.xlu0 %v229_v37, %s1192_s8 }
 0x2bb   :  { %v232_v38 = vpop.permute.xlu0 %231 }
 0x2bc   :  { %v234_v39 = vmul.f32 %v1140_v30, %v232_v38 }
 0x2be   :  { %236 = vrot.lane.b32.xlu1 %v234_v39, %s1192_s8 }
 0x330   :  { %v237_v40 = vpop.permute.xlu1 %236 }
 0x331   :  { %v239_v41 = vadd.f32 %v1142_v35, %v237_v40 }
 0x333   :  { %v240_v42 = vpack.c.bf16 %v239_v41, %v239_v41 }
 0x335   :  { %242 = vrot.lane.b32.xlu0 %v240_v42, %s1191_s5 }
 0x3a7   :  { %v243_v43 = vpop.permute.xlu0 %242 }
 0x3a8   :  { %1054 = vmatmul.mubr.msk.bf16.vlgmr.msra.gmra.mrb[4].mxu1 %vm68_vm1, %v243_v43 }
 0x3a9   :  { %1066 = vmatpush3.bf16.msra.mxu1 %v1223_v2  ;;  %1069 = vmatprep.mubr.msk.bf16.mxu1 %vm1190_vm0, %v1189_v0 }
 0x3aa   :  { %1067 = vmatprep.subr.bf16.mxu1 %v1189_v0 }
 0x3ad   :  { %1068 = vmatpush3.bf16.msra.mxu1 %v1232_v4 }
 0x3ae   :  { %1081 = vmatprep.subr.bf16.mxu1 %v1189_v0 }
 0x47b   :  { %v281_v44 = vpop.f32.mrb[4].mxu1 }
 0x47c   :  { %v294_v45 = vadd.f32 %v281_v44, %v1270_v14  ;;  %v1055_v46 = vpop.f32.mrb[5].mxu1  ;;  %v287_v50 = vadd.f32 %v281_v44, %v119_v49 }
 0x47d   :  { %v284_v47 = vpop.f32.mrb[6].mxu1 }
 0x47e   :  { %296 = vrot.lane.b32.xlu1 %v294_v45, %s1191_s5  ;;  %v1056_v48 = vpop.f32.mrb[7].mxu1  ;;  %v970_v51 = vmul.f32 -1.442695, %v287_v50  ;;  %v127_v47 = vadd.f32 %v1275_v21, %v1281_v24 }
 0x480   :  { %1143 = vpow2.f32 %v970_v51 }
 0x48a   :  { %v1144_v52 = vpop.eup %1143 }
 0x48b   :  { %v291_v53 = vadd.f32 1.0, %v1144_v52 }
 0x48d   :  { %1145 = vrcp.f32 %v291_v53 }
 0x497   :  { %v1146_v54 = vpop.eup %1145 }
 0x4f0   :  { %v297_v55 = vpop.permute.xlu1 %296 }
 0x4f1   :  { %v299_v56 = vmul.f32 %v1146_v54, %v297_v55 }
 0x4f3   :  { %301 = vrot.lane.b32.xlu0 %v299_v56, %s1191_s5 }
 0x565   :  { %v302_v57 = vpop.permute.xlu0 %301 }
 0x566   :  { %v304_v58 = vadd.f32 %v302_v57, %v119_v49 }
 0x568   :  { %1147 = vtanh.f32 %v304_v58 }
 0x572   :  { %v1148_v59 = vpop.eup %1147 }
 0x573   :  { %v306_v60 = vsub.f32 %v239_v41, %v1148_v59 }
 0x575   :  { %308 = vrot.lane.b32.xlu1 %v306_v60, %s1193_s9 }
 0x5e7   :  { %v309_v6 = vpop.permute.xlu1 %308 }
 0x5e8   :  { %v311_v7 = vmul.f32 %v1146_v54, %v309_v6 }
 0x5ea   :  { %313 = vrot.lane.b32.xlu0 %v311_v7, %s1192_s8 }
 0x65c   :  { %v314_v8 = vpop.permute.xlu0 %313 }
 0x65d   :  { %v316_v9 = vadd.f32 %v1148_v59, %v314_v8  ;;  %v132_v8 = vadd.f32 %v1281_v24, %v1321_v12 }
 0x65f   :  { %v317_v10 = vpack.c.bf16 %v316_v9, %v316_v9 }
 0x661   :  { %319 = vrot.lane.b32.xlu1 %v317_v10, %s1191_s5 }
 0x6d3   :  { %v320_v17 = vpop.permute.xlu1 %319 }
 0x6d4   :  { %1062 = vmatmul.mubr.msk.bf16.vlgmr.msra.gmra.mrb[8].mxu0 %vm68_vm1, %v320_v17 }
 0x6d5   :  { %1074 = vmatpush3.bf16.msra.mxu0 %v1223_v2  ;;  %1077 = vmatprep.mubr.msk.bf16.mxu0 %vm1190_vm0, %v1189_v0 }
 0x6d6   :  { %1075 = vmatprep.subr.bf16.mxu0 %v1189_v0 }
 0x6d9   :  { %1076 = vmatpush3.bf16.msra.mxu0 %v1232_v4 }
 0x6da   :  { %1089 = vmatprep.subr.bf16.mxu0 %v1189_v0 }
 0x7a7   :  { %v358_v18 = vpop.f32.mrb[8].mxu0 }
 0x7a8   :  { %v371_v19 = vadd.f32 %v358_v18, %v1270_v14  ;;  %v1063_v20 = vpop.f32.mrb[9].mxu0  ;;  %v364_v26 = vadd.f32 %v358_v18, %v124_v25 }
 0x7a9   :  { %v361_v22 = vpop.f32.mrb[10].mxu0 }
 0x7aa   :  { %373 = vrot.lane.b32.xlu0 %v371_v19, %s1191_s5  ;;  %v1064_v23 = vpop.f32.mrb[11].mxu0  ;;  %v972_v27 = vmul.f32 -1.442695, %v364_v26 }
 0x7ac   :  { %1149 = vpow2.f32 %v972_v27 }
 0x7b6   :  { %v1150_v28 = vpop.eup %1149 }
 0x7b7   :  { %v368_v29 = vadd.f32 1.0, %v1150_v28 }
 0x7b9   :  { %1151 = vrcp.f32 %v368_v29 }
 0x7c3   :  { %v1152_v30 = vpop.eup %1151 }
 0x81c   :  { %v374_v31 = vpop.permute.xlu0 %373 }
 0x81d   :  { %v376_v32 = vmul.f32 %v1152_v30, %v374_v31 }
 0x81f   :  { %378 = vrot.lane.b32.xlu1 %v376_v32, %s1191_s5 }
 0x891   :  { %v379_v33 = vpop.permute.xlu1 %378 }
 0x892   :  { %v381_v34 = vadd.f32 %v379_v33, %v124_v25 }
 0x894   :  { %1153 = vtanh.f32 %v381_v34 }
 0x89e   :  { %v1154_v35 = vpop.eup %1153 }
 0x89f   :  { %v383_v36 = vsub.f32 %v316_v9, %v1154_v35 }
 0x8a1   :  { %385 = vrot.lane.b32.xlu0 %v383_v36, %s1193_s9 }
 0x913   :  { %v386_v37 = vpop.permute.xlu0 %385 }
 0x914   :  { %v388_v16 = vmul.f32 %v1152_v30, %v386_v37 }
 0x916   :  { %390 = vrot.lane.b32.xlu1 %v388_v16, %s1192_s8 }
 0x988   :  { %v391_v38 = vpop.permute.xlu1 %390 }
 0x989   :  { %v393_v39 = vadd.f32 %v1154_v35, %v391_v38 }
 0x98b   :  { %v394_v40 = vpack.c.bf16 %v393_v39, %v393_v39 }
 0x98d   :  { %396 = vrot.lane.b32.xlu0 %v394_v40, %s1191_s5 }
 0x9ff   :  { %v397_v41 = vpop.permute.xlu0 %396 }
 0xa00   :  { %1070 = vmatmul.mubr.msk.bf16.vlgmr.msra.gmra.mrb[8].mxu1 %vm68_vm1, %v397_v41 }
 0xa01   :  { %1082 = vmatpush3.bf16.msra.mxu1 %v1223_v2  ;;  %1085 = vmatprep.mubr.msk.bf16.mxu1 %vm1190_vm0, %v1189_v0 }
 0xa02   :  { %1083 = vmatprep.subr.bf16.mxu1 %v1189_v0 }
 0xa05   :  { %1084 = vmatpush3.bf16.msra.mxu1 %v1232_v4 }
 0xa06   :  { %1097 = vmatprep.subr.bf16.mxu1 %v1189_v0 }
 0xad3   :  { %v435_v42 = vpop.f32.mrb[8].mxu1 }
 0xad4   :  { %v448_v43 = vadd.f32 %v435_v42, %v1270_v14  ;;  %v1071_v44 = vpop.f32.mrb[9].mxu1  ;;  %v441_v48 = vadd.f32 %v435_v42, %v127_v47 }
 0xad5   :  { %v438_v45 = vpop.f32.mrb[10].mxu1 }
 0xad6   :  { %450 = vrot.lane.b32.xlu1 %v448_v43, %s1191_s5  ;;  %v1072_v46 = vpop.f32.mrb[11].mxu1  ;;  %v974_v49 = vmul.f32 -1.442695, %v441_v48 }
 0xad8   :  { %1155 = vpow2.f32 %v974_v49 }
 0xae2   :  { %v1156_v50 = vpop.eup %1155 }
 0xae3   :  { %v445_v51 = vadd.f32 1.0, %v1156_v50 }
 0xae5   :  { %1157 = vrcp.f32 %v445_v51 }
 0xaef   :  { %v1158_v52 = vpop.eup %1157 }
 0xb48   :  { %v451_v53 = vpop.permute.xlu1 %450 }
 0xb49   :  { %v453_v54 = vmul.f32 %v1158_v52, %v451_v53 }
 0xb4b   :  { %455 = vrot.lane.b32.xlu0 %v453_v54, %s1191_s5 }
 0xbbd   :  { %v456_v55 = vpop.permute.xlu0 %455 }
 0xbbe   :  { %v458_v56 = vadd.f32 %v456_v55, %v127_v47 }
 0xbc0   :  { %1159 = vtanh.f32 %v458_v56 }
 0xbca   :  { %v1160_v57 = vpop.eup %1159 }
 0xbcb   :  { %v460_v58 = vsub.f32 %v393_v39, %v1160_v57 }
 0xbcd   :  { %462 = vrot.lane.b32.xlu1 %v460_v58, %s1193_s9 }
 0xc3f   :  { %v463_v59 = vpop.permute.xlu1 %462 }
 0xc40   :  { %v465_v21 = vmul.f32 %v1158_v52, %v463_v59 }
 0xc42   :  { %467 = vrot.lane.b32.xlu0 %v465_v21, %s1192_s8 }
 0xcb4   :  { %v468_v60 = vpop.permute.xlu0 %467 }
 0xcb5   :  { %v470_v61 = vadd.f32 %v1160_v57, %v468_v60  ;;  %v140_v57 = vadd.f32 %v1319_v11, %v1281_v24 }
 0xcb7   :  { %v471_v62 = vpack.c.bf16 %v470_v61, %v470_v61 }
 0xcb9   :  { %473 = vrot.lane.b32.xlu1 %v471_v62, %s1191_s5 }
 0xd2b   :  { %v474_v63 = vpop.permute.xlu1 %473 }
 0xd2c   :  { %1078 = vmatmul.mubr.msk.bf16.vlgmr.msra.gmra.mrb[12].mxu0 %vm68_vm1, %v474_v63 }
 0xd2d   :  { %1090 = vmatpush3.bf16.msra.mxu0 %v1223_v2  ;;  %1093 = vmatprep.mubr.msk.bf16.mxu0 %vm1190_vm0, %v1189_v0 }
 0xd2e   :  { %1091 = vmatprep.subr.bf16.mxu0 %v1189_v0 }
 0xd31   :  { %1092 = vmatpush3.bf16.msra.mxu0 %v1232_v4 }
 0xd32   :  { %1105 = vmatprep.subr.bf16.mxu0 %v1189_v0 }
 0xdff   :  { %v512_v1 = vpop.f32.mrb[12].mxu0 }
 0xe00   :  { %v525_v3 = vadd.f32 %v512_v1, %v1270_v14  ;;  %v1079_v5 = vpop.f32.mrb[13].mxu0  ;;  %v518_v9 = vadd.f32 %v512_v1, %v132_v8 }
 0xe01   :  { %v515_v6 = vpop.f32.mrb[14].mxu0 }
 0xe02   :  { %527 = vrot.lane.b32.xlu0 %v525_v3, %s1191_s5  ;;  %v1080_v7 = vpop.f32.mrb[15].mxu0  ;;  %v976_v10 = vmul.f32 -1.442695, %v518_v9 }
 0xe04   :  { %1161 = vpow2.f32 %v976_v10 }
 0xe0e   :  { %v1162_v17 = vpop.eup %1161 }
 0xe0f   :  { %v522_v18 = vadd.f32 1.0, %v1162_v17 }
 0xe11   :  { %1163 = vrcp.f32 %v522_v18 }
 0xe1b   :  { %v1164_v19 = vpop.eup %1163 }
 0xe74   :  { %v528_v20 = vpop.permute.xlu0 %527 }
 0xe75   :  { %v530_v22 = vmul.f32 %v1164_v19, %v528_v20 }
 0xe77   :  { %532 = vrot.lane.b32.xlu1 %v530_v22, %s1191_s5 }
 0xee9   :  { %v533_v23 = vpop.permute.xlu1 %532 }
 0xeea   :  { %v535_v25 = vadd.f32 %v533_v23, %v132_v8 }
 0xeec   :  { %1165 = vtanh.f32 %v535_v25  ;;  %v143_v25 = vadd.f32 %v1323_v13, %v1281_v24  ;;  %v1135_v13 = vld [vmem:[%s1438_s1 + $0x28] sm:$0xff]  }
 0xef6   :  { %v1166_v26 = vpop.eup %1165 }
 0xef7   :  { %v537_v27 = vsub.f32 %v470_v61, %v1166_v26 }
 0xef9   :  { %539 = vrot.lane.b32.xlu0 %v537_v27, %s1193_s9 }
 0xf6b   :  { %v540_v28 = vpop.permute.xlu0 %539 }
 0xf6c   :  { %v542_v12 = vmul.f32 %v1164_v19, %v540_v28 }
 0xf6e   :  { %544 = vrot.lane.b32.xlu1 %v542_v12, %s1192_s8 }
 0xfe0   :  { %v545_v29 = vpop.permute.xlu1 %544 }
 0xfe1   :  { %v547_v30 = vadd.f32 %v1166_v26, %v545_v29 }
 0xfe3   :  { %v548_v31 = vpack.c.bf16 %v547_v30, %v547_v30 }
 0xfe5   :  { %550 = vrot.lane.b32.xlu0 %v548_v31, %s1191_s5 }
0x1057   :  { %v551_v32 = vpop.permute.xlu0 %550 }
0x1058   :  { %1086 = vmatmul.mubr.msk.bf16.vlgmr.msra.gmra.mrb[12].mxu1 %vm68_vm1, %v551_v32 }
0x1059   :  { %1098 = vmatpush3.bf16.msra.mxu1 %v1223_v2  ;;  %1101 = vmatprep.mubr.msk.bf16.mxu1 %vm1190_vm0, %v1189_v0  ;;  %v135_v2 = vadd.f32 %v1281_v24, %v1325_v15  ;;  %v1134_v24 = vld [vmem:[%s1438_s1 + $0x20] sm:$0xff]  }
0x105a   :  { %1099 = vmatprep.subr.bf16.mxu1 %v1189_v0 }
0x105d   :  { %1100 = vmatpush3.bf16.msra.mxu1 %v1232_v4 }
0x105e   :  { %1113 = vmatprep.subr.bf16.mxu1 %v1189_v0 }
0x112b   :  { %v589_v33 = vpop.f32.mrb[12].mxu1 }
0x112c   :  { %v602_v34 = vadd.f32 %v589_v33, %v1270_v14  ;;  %v1087_v35 = vpop.f32.mrb[13].mxu1  ;;  %v595_v16 = vadd.f32 %v589_v33, %v135_v2 }
0x112d   :  { %v592_v36 = vpop.f32.mrb[14].mxu1 }
0x112e   :  { %604 = vrot.lane.b32.xlu1 %v602_v34, %s1191_s5  ;;  %v1088_v37 = vpop.f32.mrb[15].mxu1  ;;  %v978_v38 = vmul.f32 -1.442695, %v595_v16 }
0x1130   :  { %1167 = vpow2.f32 %v978_v38 }
0x113a   :  { %v1168_v39 = vpop.eup %1167 }
0x113b   :  { %v599_v40 = vadd.f32 1.0, %v1168_v39  ;;  %v1136_v39 = vld [vmem:[%s1438_s1 + $0x30] sm:$0xff]  }
0x113d   :  { %1169 = vrcp.f32 %v599_v40  ;;  %v983_v40 = vld [vmem:[%s1440_s2 + $0x2] ss:$0 sm:$0xff] }
0x1147   :  { %v1170_v4 = vpop.eup %1169 }
0x11a0   :  { %v605_v41 = vpop.permute.xlu1 %604 }
0x11a1   :  { %v607_v42 = vmul.f32 %v1170_v4, %v605_v41 }
0x11a3   :  { %609 = vrot.lane.b32.xlu0 %v607_v42, %s1191_s5 }
0x1215   :  { %v610_v43 = vpop.permute.xlu0 %609 }
0x1216   :  { %v612_v44 = vadd.f32 %v610_v43, %v135_v2 }
0x1218   :  { %1171 = vtanh.f32 %v612_v44 }
0x1222   :  { %v1172_v45 = vpop.eup %1171 }
0x1223   :  { %v614_v46 = vsub.f32 %v547_v30, %v1172_v45 }
0x1225   :  { %616 = vrot.lane.b32.xlu1 %v614_v46, %s1193_s9 }
0x1297   :  { %v617_v47 = vpop.permute.xlu1 %616 }
0x1298   :  { %v619_v15 = vmul.f32 %v1170_v4, %v617_v47 }
0x129a   :  { %621 = vrot.lane.b32.xlu0 %v619_v15, %s1192_s8  ;;  %v987_v15 = vld [vmem:[%s1440_s2 + $0x3] ss:$0 sm:$0xff] }
0x130c   :  { %v622_v48 = vpop.permute.xlu0 %621 }
0x130d   :  { %v624_v49 = vadd.f32 %v1172_v45, %v622_v48 }
0x130f   :  { %v625_v50 = vpack.c.bf16 %v624_v49, %v624_v49 }
0x1311   :  { %627 = vrot.lane.b32.xlu1 %v625_v50, %s1191_s5 }
0x1383   :  { %v628_v51 = vpop.permute.xlu1 %627 }
0x1384   :  { %1094 = vmatmul.mubr.msk.bf16.vlgmr.msra.gmra.mrb[16].mxu0 %vm68_vm1, %v628_v51 }
0x1385   :  { %1109 = vmatprep.mubr.msk.bf16.mxu0 %vm1190_vm0, %v1189_v0  ;;  %1106 = vmatpush3.bf16.msra.mxu0 %v1134_v24 }
0x1386   :  { %1107 = vmatprep.subr.bf16.mxu0 %v1189_v0 }
0x1389   :  { %1108 = vmatpush3.bf16.msra.mxu0 %v1135_v13 }
0x138a   :  { %1119 = vmatprep.subr.bf16.mxu0 %v1189_v0 }
0x1457   :  { %v666_v52 = vpop.f32.mrb[16].mxu0 }
0x1458   :  { %v679_v53 = vadd.f32 %v666_v52, %v1270_v14  ;;  %v1095_v54 = vpop.f32.mrb[17].mxu0  ;;  %v672_v58 = vadd.f32 %v666_v52, %v140_v57 }
0x1459   :  { %v669_v55 = vpop.f32.mrb[18].mxu0 }
0x145a   :  { %681 = vrot.lane.b32.xlu0 %v679_v53, %s1191_s5  ;;  %v1096_v56 = vpop.f32.mrb[19].mxu0  ;;  %v980_v59 = vmul.f32 -1.442695, %v672_v58  ;;  %v990_v55 = vld [vmem:[%s1440_s2 + $0x4] ss:$0 sm:$0xff] }
0x145c   :  { %1173 = vpow2.f32 %v980_v59 }
0x1466   :  { %v1174_v21 = vpop.eup %1173 }
0x1467   :  { %v676_v60 = vadd.f32 1.0, %v1174_v21 }
0x1469   :  { %1175 = vrcp.f32 %v676_v60 }
0x1473   :  { %v1176_v61 = vpop.eup %1175 }
0x14cc   :  { %v682_v62 = vpop.permute.xlu0 %681 }
0x14cd   :  { %v684_v63 = vmul.f32 %v1176_v61, %v682_v62 }
0x14cf   :  { %686 = vrot.lane.b32.xlu1 %v684_v63, %s1191_s5 }
0x1541   :  { %v687_v1 = vpop.permute.xlu1 %686 }
0x1542   :  { %v689_v3 = vadd.f32 %v687_v1, %v140_v57 }
0x1544   :  { %1177 = vtanh.f32 %v689_v3 }
0x154e   :  { %v1178_v5 = vpop.eup %1177 }
0x154f   :  { %v691_v6 = vsub.f32 %v624_v49, %v1178_v5 }
0x1551   :  { %693 = vrot.lane.b32.xlu0 %v691_v6, %s1193_s9 }
0x15c3   :  { %v694_v7 = vpop.permute.xlu0 %693 }
0x15c4   :  { %v696_v11 = vmul.f32 %v1176_v61, %v694_v7 }
0x15c6   :  { %698 = vrot.lane.b32.xlu1 %v696_v11, %s1192_s8 }
0x1638   :  { %v699_v8 = vpop.permute.xlu1 %698 }
0x1639   :  { %v701_v9 = vadd.f32 %v1178_v5, %v699_v8 }
0x163b   :  { %v702_v10 = vpack.c.bf16 %v701_v9, %v701_v9 }
0x163d   :  { %704 = vrot.lane.b32.xlu0 %v702_v10, %s1191_s5 }
0x16af   :  { %v705_v17 = vpop.permute.xlu0 %704 }
0x16b0   :  { %1102 = vmatmul.mubr.msk.bf16.vlgmr.msra.gmra.mrb[16].mxu1 %vm68_vm1, %v705_v17 }
0x16b1   :  { %1115 = vmatprep.mubr.msk.bf16.mxu1 %vm1190_vm0, %v1189_v0  ;;  %1114 = vmatpush3.bf16.msra.mxu1 %v1136_v39 }
0x1783   :  { %v743_v18 = vpop.f32.mrb[16].mxu1 }
0x1784   :  { %v756_v19 = vadd.f32 %v743_v18, %v1270_v14  ;;  %v1103_v20 = vpop.f32.mrb[17].mxu1  ;;  %v749_v26 = vadd.f32 %v743_v18, %v143_v25 }
0x1785   :  { %v746_v22 = vpop.f32.mrb[18].mxu1 }
0x1786   :  { %758 = vrot.lane.b32.xlu1 %v756_v19, %s1191_s5  ;;  %v1104_v23 = vpop.f32.mrb[19].mxu1  ;;  %v982_v27 = vmul.f32 -1.442695, %v749_v26 }
0x1788   :  { %1179 = vpow2.f32 %v982_v27 }
0x1792   :  { %v1180_v28 = vpop.eup %1179 }
0x1793   :  { %v753_v12 = vadd.f32 1.0, %v1180_v28 }
0x1795   :  { %1181 = vrcp.f32 %v753_v12 }
0x179f   :  { %v1182_v29 = vpop.eup %1181 }
0x17f8   :  { %v759_v30 = vpop.permute.xlu1 %758 }
0x17f9   :  { %v761_v31 = vmul.f32 %v1182_v29, %v759_v30 }
0x17fb   :  { %763 = vrot.lane.b32.xlu0 %v761_v31, %s1191_s5 }
0x186d   :  { %v764_v14 = vpop.permute.xlu0 %763 }
0x186e   :  { %v766_v32 = vadd.f32 %v764_v14, %v143_v25 }
0x1870   :  { %1183 = vtanh.f32 %v766_v32 }
0x187a   :  { %v1184_v33 = vpop.eup %1183 }
0x187b   :  { %v768_v34 = vsub.f32 %v701_v9, %v1184_v33 }
0x187d   :  { %770 = vrot.lane.b32.xlu1 %v768_v34, %s1193_s9 }
0x18ef   :  { %v771_v35 = vpop.permute.xlu1 %770 }
0x18f0   :  { %v773_v36 = vmul.f32 %v1182_v29, %v771_v35 }
0x18f2   :  { %775 = vrot.lane.b32.xlu0 %v773_v36, %s1192_s8 }
0x1964   :  { %v776_v37 = vpop.permute.xlu0 %775 }
0x1965   :  { %v778_v2 = vadd.f32 %v1184_v33, %v776_v37 }
0x1967   :  { %v779_v16 = vpack.c.bf16 %v778_v2, %v778_v2 }
0x1969   :  { %785 = vrot.lane.b32.xlu1 %v779_v16, %s1191_s5 }
0x19db   :  { %v786_v38 = vpop.permute.xlu1 %785 }
0x19dc   :  { %1110 = vmatmul.mubr.msk.bf16.vlgmr.msra.gmra.mrb[20].mxu0 %vm68_vm1, %v786_v38 }
0x19dd   :  { %1121 = vmatprep.mubr.msk.bf16.mxu0 %vm1190_vm0, %v1189_v0  ;;  %v42_v0 = vld [vmem:[%s1438_s1 + $0x38] sm:$0xf] }
0x19de   :  { %v910_v47 = vsel %vm908_vm3, %v42_v0, 0 }
0x19df   :  { %1120 = vmatpush3.bf16.msra.mxu0 %v910_v47 }
0x1aaf   :  { %v836_v4 = vpop.f32.mrb[20].mxu0 }
0x1ab0   :  { %v837_v41 = vadd.f32 %v983_v40, %v836_v4  ;;  %v1111_v42 = vpop.f32.mrb[21].mxu0 }
0x1ab1   :  { %v839_v43 = vpop.f32.mrb[22].mxu0 }
0x1ab2   :  { %1185 = vtanh.f32 %v837_v41  ;;  %v1112_v44 = vpop.f32.mrb[23].mxu0 }
0x1abc   :  { %v1186_v45 = vpop.eup %1185 }
0x1abd   :  { %v843_v46 = vpack.c.bf16 %v1186_v45, %v1186_v45 }
0x1abf   :  { %1116 = vmatmul.mubr.msk.bf16.vlgmr.msra.gmra.mrb[20].mxu1 %vm854_vm2, %v843_v46 }
0x1b92   :  { %v892_v48 = vpop.f32.mrb[20].mxu1 }
0x1b93   :  { %v893_v49 = vadd.f32 %v987_v15, %v892_v48  ;;  %v1117_v50 = vpop.f32.mrb[21].mxu1 }
0x1b94   :  { %v895_v51 = vpop.f32.mrb[22].mxu1 }
0x1b95   :  { %1187 = vtanh.f32 %v893_v49  ;;  %v1118_v52 = vpop.f32.mrb[23].mxu1 }
0x1b9f   :  { %v1188_v53 = vpop.eup %1187 }
0x1ba0   :  { %v899_v54 = vpack.c.bf16 %v1188_v53, %v1188_v53 }
0x1ba2   :  { %1122 = vmatmul.mubr.msk.bf16.vlgmr.msra.gmra.mrb[24].mxu0 %vm904_vm4, %v899_v54 }
0x1c75   :  { %v946_v56 = vpop.f32.mrb[24].mxu0 }
0x1c76   :  { %v947_v57 = vadd.f32 %v990_v55, %v946_v56  ;;  %v1123_v58 = vpop.f32.mrb[25].mxu0 }
0x1c77   :  { %v949_v59 = vpop.f32.mrb[26].mxu0 }
0x1c78   :  { %952 = vst [vmem:[%s1441_s3] sm:$0xff] %v947_v57  ;;  %v1124_v21 = vpop.f32.mrb[27].mxu0 }

</bundles_post_ra>
